<compile_context>
chip_gen: v7x
topology: tpu7x:2x2x1
jax: 0.10.0
libtpu: 0.0.40
codegen_flags: <defaults>
</compile_context>

<pallas_src>
import math

import jax
import jax.numpy as jnp
from jax.experimental import pallas as pl
from jax.experimental.pallas import tpu as pltpu


EPS = 1e-6
MAX_FOLD = 16  # cap on rows folded into the lane axis (perf review)


# ----------------------------------------------------------------------------
# Helpers
# ----------------------------------------------------------------------------
def _round_up(x, m):
    return -(-x // m) * m


def _vmem_capacity_bytes():
    """Per-core VMEM capacity; conservative fallback if the query fails."""
    try:
        info = pltpu.get_tpu_info()
        cap = getattr(info, "vmem_capacity_bytes", None)
        if cap:
            return int(cap)
    except Exception:
        pass
    return 64 * 1024 * 1024  # v7x per-TC VMEM (most restrictive generation)


def _pick_row_tile(super_rows, lane_width, sublane, vmem_cap):
    """Row tile in 'super rows'.

    * Budget ~vmem_cap/16 (<= 8 MiB) of f32 *working* bytes per block, so the
      double-buffered in/out blocks plus in-kernel f32 temporaries stay well
      inside v7x's 64 MiB VMEM (and are tiny on v5e/v6e).
    * Guarantee at least 2 grid steps whenever there is more than one sublane
      of rows, so the 2 TensorCores of v7x both get work and the DMA pipeline
      has something to overlap.
    """
    per_block = min(vmem_cap // 16, 8 * 1024 * 1024)
    row_bytes_f32 = lane_width * 4
    max_rows = max(sublane, (per_block // max(row_bytes_f32, 1)) // sublane * sublane)
    max_rows = min(max_rows, 4096)
    if super_rows <= sublane:
        return super_rows  # single tiny full-extent block (legal block shape)
    half = _round_up((super_rows + 1) // 2, sublane)
    return max(sublane, min(max_rows, half))


# ----------------------------------------------------------------------------
# Kernels
# ----------------------------------------------------------------------------
def _make_plain_kernel(f):
    """LayerNorm over the last axis when the feature axis is already lane-dense
    (f % 128 == 0)."""
    inv_n = 1.0 / f
    # TODO(synk): PyTorch's unbiased std is NaN for f == 1 (0/0); we stay finite.
    inv_nm1 = 1.0 / (f - 1) if f > 1 else 1.0

    def kernel(x_ref, alpha_ref, bias_ref, o_ref):
        x = x_ref[...].astype(jnp.float32)                          # (R, F)
        s1 = jnp.sum(x, axis=-1, keepdims=True)                     # one pass
        s2 = jnp.sum(x * x, axis=-1, keepdims=True)
        mean = s1 * inv_n
        var = jnp.maximum((s2 - s1 * mean) * inv_nm1, 0.0)
        inv_std = 1.0 / (jnp.sqrt(var) + EPS)                       # exact divide
        y = (x - mean) * (alpha_ref[...] * inv_std) + bias_ref[...]
        o_ref[...] = y.astype(o_ref.dtype)

    return kernel


def _make_folded_kernel(f):
    """LayerNorm where k consecutive logical rows are folded into the lane axis
    (lane width = k*f).  Per-row segmented reductions / broadcasts are done
    with tiny 0/1 selector matmuls; the selectors are resident VMEM inputs
    (built once in the wrapper), not rebuilt per grid step."""
    inv_n = 1.0 / f
    inv_nm1 = 1.0 / (f - 1) if f > 1 else 1.0
    hi = jax.lax.Precision.HIGHEST  # keep f32 accuracy on the MXU

    def kernel(x_ref, alpha_ref, bias_ref, seg_ref, segt_ref, o_ref):
        x = x_ref[...].astype(jnp.float32)                          # (R, k*f)
        seg = seg_ref[...]                                          # (k*f, k) resident
        seg_t = segt_ref[...]                                       # (k, k*f) resident

        s1 = jnp.dot(x, seg, precision=hi,
                     preferred_element_type=jnp.float32)            # (R, k)
        s2 = jnp.dot(x * x, seg, precision=hi,
                     preferred_element_type=jnp.float32)            # (R, k)
        mean_g = s1 * inv_n
        var_g = jnp.maximum((s2 - s1 * mean_g) * inv_nm1, 0.0)
        inv_g = 1.0 / (jnp.sqrt(var_g) + EPS)                       # exact divide

        mean_b = jnp.dot(mean_g, seg_t, precision=hi,
                         preferred_element_type=jnp.float32)        # (R, k*f)
        inv_b = jnp.dot(inv_g, seg_t, precision=hi,
                        preferred_element_type=jnp.float32)         # (R, k*f)

        y = (x - mean_b) * (alpha_ref[...] * inv_b) + bias_ref[...]
        o_ref[...] = y.astype(o_ref.dtype)

    return kernel


# ----------------------------------------------------------------------------
# Wrapper (== Encoder.forward with an empty layer list)
# ----------------------------------------------------------------------------
def encoder_forward(x, mask, alpha, bias, *, row_tile=None):
    """Pallas implementation of Encoder.forward with an empty layer list.

    x:     (batch, seq_len, d_model)
    mask:  (batch, seq_len, seq_len)  -- unused (no attention layers supplied)
    alpha: (d_model,)
    bias:  (d_model,)
    """
    del mask  # no encoder blocks -> mask never consumed
    b, s, f = x.shape
    rows = b * s
    dtype = x.dtype
    itemsize = jnp.dtype(dtype).itemsize
    sublane = max(8, 32 // itemsize)           # 8 f32 / 16 bf16 / 32 int8

    # Fold k consecutive rows into the lane axis so HBM-facing blocks are
    # (close to) 128-lane dense; k is capped so the selector matmuls stay a
    # negligible fraction of the DMA time on all generations (incl. v5e f32).
    if f % 128 == 0:
        k = 1
    else:
        k = min(128 // math.gcd(f, 128), MAX_FOLD)
        # TODO(synk): for f not a multiple of 8 the capped k*f is not a
        # 128-multiple; the tail lane tile uses masked stores in that case.
    kf = k * f
    super_rows = -(-rows // k)

    vmem_cap = _vmem_capacity_bytes()
    if row_tile is None:
        row_tile = _pick_row_tile(super_rows, kf, sublane, vmem_cap)
    row_tile = max(1, min(row_tile, super_rows))

    grid = -(-super_rows // row_tile)          # cdiv grid; no divisor search
    padded_super_rows = grid * row_tile
    padded_rows = padded_super_rows * k

    x_flat = x.reshape(rows, f)
    if padded_rows != rows:
        x_flat = jnp.pad(x_flat, ((0, padded_rows - rows), (0, 0)))
    x2d = x_flat.reshape(padded_super_rows, kf)

    alpha_t = jnp.tile(alpha.astype(jnp.float32).reshape(1, f), (1, k))  # (1, kf)
    bias_t = jnp.tile(bias.astype(jnp.float32).reshape(1, f), (1, k))    # (1, kf)

    x_spec = pl.BlockSpec((row_tile, kf), lambda i: (i, 0))
    vec_spec = pl.BlockSpec((1, kf), lambda i: (0, 0))          # resident
    out_spec = pl.BlockSpec((row_tile, kf), lambda i: (i, 0))

    inputs = [x2d, alpha_t, bias_t]
    in_specs = [x_spec, vec_spec, vec_spec]

    if k > 1:
        # Segment selectors built ONCE here (hoisted out of the kernel body).
        lane_seg = jnp.arange(kf, dtype=jnp.int32) // f
        seg = (lane_seg[:, None] == jnp.arange(k, dtype=jnp.int32)[None, :]
               ).astype(jnp.float32)                             # (kf, k)
        seg_t = jnp.transpose(seg)                               # (k, kf)
        inputs += [seg, seg_t]
        in_specs += [pl.BlockSpec((kf, k), lambda i: (0, 0)),    # resident
                     pl.BlockSpec((k, kf), lambda i: (0, 0))]    # resident
        kernel = _make_folded_kernel(f)
    else:
        kernel = _make_plain_kernel(f)

    # Raise the scoped VMEM limit (v5e default is only 16 MiB) with headroom
    # below physical VMEM on every generation (v7x: 48 of 64 MiB).
    vmem_limit = int(min(vmem_cap * 3 // 4, 96 * 1024 * 1024))

    cost = pl.CostEstimate(
        flops=int(12 * padded_super_rows * kf),
        transcendentals=int(2 * padded_super_rows * k),
        bytes_accessed=int(2 * padded_super_rows * kf * itemsize),
    )

    out2d = pl.pallas_call(
        kernel,
        out_shape=jax.ShapeDtypeStruct((padded_super_rows, kf), dtype),
        grid_spec=pl.GridSpec(
            grid=(grid,),
            in_specs=in_specs,
            out_specs=out_spec,
        ),
        compiler_params=pltpu.CompilerParams(
            dimension_semantics=("parallel",),
            vmem_limit_bytes=vmem_limit,
        ),
        cost_estimate=cost,
    )(*inputs)

    out_flat = out2d.reshape(padded_rows, f)
    if padded_rows != rows:
        out_flat = out_flat[:rows]
    return out_flat.reshape(b, s, f)


# ----------------------------------------------------------------------------
# Pure-JAX reference (mirrors the PyTorch forward exactly)
# ----------------------------------------------------------------------------
def _reference(x, alpha, bias):
    xf = x.astype(jnp.float32)
    mean = jnp.mean(xf, axis=-1, keepdims=True)
    n = max(x.shape[-1] - 1, 1)
    var = jnp.sum((xf - mean) ** 2, axis=-1, keepdims=True) / n
    std = jnp.sqrt(var)
    return (alpha * (xf - mean) / (std + EPS) + bias).astype(x.dtype)


if __name__ == "__main__":
    key = jax.random.PRNGKey(0)
    k1, k2, k3, k4, k5 = jax.random.split(key, 5)

    # Case 1: d_model = 32 -> row->lane fold (k=4, 128-wide lane blocks).
    b, s, d = 2, 8, 32
    x1 = jax.random.normal(k1, (b, s, d), dtype=jnp.float32)
    mask1 = jnp.ones((b, s, s), dtype=jnp.float32)
    alpha1 = 1.0 + 0.1 * jax.random.normal(k4, (d,), dtype=jnp.float32)
    bias1 = 0.1 * jax.random.normal(k5, (d,), dtype=jnp.float32)
    out1 = jax.block_until_ready(encoder_forward(x1, mask1, alpha1, bias1))
    ref1 = _reference(x1, alpha1, bias1)
    assert out1.shape == (b, s, d)
    assert jnp.allclose(out1, ref1, atol=1e-3, rtol=1e-3), "mismatch (fold path)"

    # Case 2: d_model = 128 -> direct lane-dense path (k=1), grid of 2 tiles.
    b2, s2, d2 = 2, 16, 128
    x2 = jax.random.normal(k2, (b2, s2, d2), dtype=jnp.float32)
    mask2 = jnp.ones((b2, s2, s2), dtype=jnp.float32)
    alpha2 = jnp.ones((d2,), dtype=jnp.float32)
    bias2 = jnp.zeros((d2,), dtype=jnp.float32)
    out2 = jax.block_until_ready(encoder_forward(x2, mask2, alpha2, bias2))
    ref2 = _reference(x2, alpha2, bias2)
    assert out2.shape == (b2, s2, d2)
    assert jnp.allclose(out2, ref2, atol=1e-3, rtol=1e-3), "mismatch (plain path)"

    # Case 3: odd row count -> exercises the row-padding fallback (rows % k != 0).
    b3, s3, d3 = 3, 7, 32
    x3 = jax.random.normal(k3, (b3, s3, d3), dtype=jnp.float32)
    mask3 = jnp.ones((b3, s3, s3), dtype=jnp.float32)
    alpha3 = jnp.ones((d3,), dtype=jnp.float32)
    bias3 = jnp.zeros((d3,), dtype=jnp.float32)
    out3 = jax.block_until_ready(encoder_forward(x3, mask3, alpha3, bias3))
    ref3 = _reference(x3, alpha3, bias3)
    assert out3.shape == (b3, s3, d3)
    assert jnp.allclose(out3, ref3, atol=1e-3, rtol=1e-3), "mismatch (padded path)"

    print("KERNEL_OK")
</pallas_src>

<mosaic_0001>
module attributes {stable_mosaic.version = 11 : i64} {
  func.func @kernel(%arg0: i32, %arg1: memref<4x128xf32, #tpu.memory_space<vmem>>, %arg2: memref<1x128xf32, #tpu.memory_space<vmem>>, %arg3: memref<1x128xf32, #tpu.memory_space<vmem>>, %arg4: memref<128x4xf32, #tpu.memory_space<vmem>>, %arg5: memref<4x128xf32, #tpu.memory_space<vmem>>, %arg6: memref<4x128xf32, #tpu.memory_space<vmem>>) attributes {dimension_semantics = [#tpu.dimension_semantics<parallel>], iteration_bounds = array<i64: 1>, scalar_prefetch = 0 : i64, scratch_operands = 0 : i64, tpu.core_type = #tpu.core_type<tc>, window_params = [{transform_indices = @transform_0, window_bounds = array<i64: 4, 128>}, {pipeline_mode = #tpu.pipeline_mode<synchronous>, transform_indices = @transform_1, window_bounds = array<i64: 1, 128>}, {pipeline_mode = #tpu.pipeline_mode<synchronous>, transform_indices = @transform_2, window_bounds = array<i64: 1, 128>}, {pipeline_mode = #tpu.pipeline_mode<synchronous>, transform_indices = @transform_3, window_bounds = array<i64: 128, 4>}, {pipeline_mode = #tpu.pipeline_mode<synchronous>, transform_indices = @transform_4, window_bounds = array<i64: 4, 128>}, {transform_indices = @transform_5, window_bounds = array<i64: 4, 128>}]} {
    %c0 = arith.constant 0 : index
    %c0_0 = arith.constant 0 : index
    %0 = vector.load %arg1[%c0, %c0_0] : memref<4x128xf32, #tpu.memory_space<vmem>>, vector<4x128xf32>
    %c0_1 = arith.constant 0 : index
    %c0_2 = arith.constant 0 : index
    %1 = vector.load %arg4[%c0_1, %c0_2] : memref<128x4xf32, #tpu.memory_space<vmem>>, vector<128x4xf32>
    %c0_3 = arith.constant 0 : index
    %c0_4 = arith.constant 0 : index
    %2 = vector.load %arg5[%c0_3, %c0_4] : memref<4x128xf32, #tpu.memory_space<vmem>>, vector<4x128xf32>
    %cst = arith.constant dense<0.000000e+00> : vector<4x4xf32>
    %3 = tpu.matmul %0, %1, %cst {dimension_numbers = #tpu.dot_dimension_numbers<[1], [0], [0], [1], [0, 0, 1, 1], [], []>, precision = #tpu.contract_precision<fp32>} : vector<4x128xf32>, vector<128x4xf32>, vector<4x4xf32> -> vector<4x4xf32>
    %4 = arith.mulf %0, %0 : vector<4x128xf32>
    %cst_5 = arith.constant dense<0.000000e+00> : vector<4x4xf32>
    %5 = tpu.matmul %4, %1, %cst_5 {dimension_numbers = #tpu.dot_dimension_numbers<[1], [0], [0], [1], [0, 0, 1, 1], [], []>, precision = #tpu.contract_precision<fp32>} : vector<4x128xf32>, vector<128x4xf32>, vector<4x4xf32> -> vector<4x4xf32>
    %cst_6 = arith.constant 3.125000e-02 : f32
    %6 = vector.broadcast %cst_6 : f32 to vector<4x4xf32>
    %7 = arith.mulf %3, %6 : vector<4x4xf32>
    %8 = arith.mulf %3, %7 : vector<4x4xf32>
    %9 = arith.subf %5, %8 : vector<4x4xf32>
    %cst_7 = arith.constant 0.0322580636 : f32
    %10 = vector.broadcast %cst_7 : f32 to vector<4x4xf32>
    %11 = arith.mulf %9, %10 : vector<4x4xf32>
    %cst_8 = arith.constant 0.000000e+00 : f32
    %12 = vector.broadcast %cst_8 : f32 to vector<4x4xf32>
    %13 = arith.maximumf %11, %12 : vector<4x4xf32>
    %14 = math.sqrt %13 : vector<4x4xf32>
    %cst_9 = arith.constant 9.99999997E-7 : f32
    %15 = vector.broadcast %cst_9 : f32 to vector<4x4xf32>
    %16 = arith.addf %14, %15 : vector<4x4xf32>
    %cst_10 = arith.constant 1.000000e+00 : f32
    %17 = vector.broadcast %cst_10 : f32 to vector<4x4xf32>
    %18 = arith.divf %17, %16 : vector<4x4xf32>
    %cst_11 = arith.constant dense<0.000000e+00> : vector<4x128xf32>
    %19 = tpu.matmul %7, %2, %cst_11 {dimension_numbers = #tpu.dot_dimension_numbers<[1], [0], [0], [1], [0, 0, 1, 1], [], []>, precision = #tpu.contract_precision<fp32>} : vector<4x4xf32>, vector<4x128xf32>, vector<4x128xf32> -> vector<4x128xf32>
    %cst_12 = arith.constant dense<0.000000e+00> : vector<4x128xf32>
    %20 = tpu.matmul %18, %2, %cst_12 {dimension_numbers = #tpu.dot_dimension_numbers<[1], [0], [0], [1], [0, 0, 1, 1], [], []>, precision = #tpu.contract_precision<fp32>} : vector<4x4xf32>, vector<4x128xf32>, vector<4x128xf32> -> vector<4x128xf32>
    %21 = arith.subf %0, %19 : vector<4x128xf32>
    %c0_13 = arith.constant 0 : index
    %c0_14 = arith.constant 0 : index
    %22 = vector.load %arg2[%c0_13, %c0_14] : memref<1x128xf32, #tpu.memory_space<vmem>>, vector<1x128xf32>
    %23 = vector.broadcast %22 : vector<1x128xf32> to vector<4x128xf32>
    %24 = arith.mulf %23, %20 : vector<4x128xf32>
    %25 = arith.mulf %21, %24 : vector<4x128xf32>
    %c0_15 = arith.constant 0 : index
    %c0_16 = arith.constant 0 : index
    %26 = vector.load %arg3[%c0_15, %c0_16] : memref<1x128xf32, #tpu.memory_space<vmem>>, vector<1x128xf32>
    %27 = vector.broadcast %26 : vector<1x128xf32> to vector<4x128xf32>
    %28 = arith.addf %25, %27 : vector<4x128xf32>
    %c0_17 = arith.constant 0 : index
    %c0_18 = arith.constant 0 : index
    %29 = vector.load %arg6[%c0_17, %c0_18] : memref<4x128xf32, #tpu.memory_space<vmem>>, vector<4x128xf32>
    tpu.vector_store %arg6[%c0_17, %c0_18], %28 {strides = array<i32>} : memref<4x128xf32, #tpu.memory_space<vmem>>, vector<4x128xf32>,
    return
  }
  func.func @transform_0(%arg0: i32) -> (i32, i32) {
    %c0_i32 = arith.constant 0 : i32
    %c0_i32_0 = arith.constant 0 : i32
    return %arg0, %c0_i32 : i32, i32
  }
  func.func @transform_1(%arg0: i32) -> (i32, i32) {
    %c0_i32 = arith.constant 0 : i32
    %c0_i32_0 = arith.constant 0 : i32
    %c0_i32_1 = arith.constant 0 : i32
    return %c0_i32, %c0_i32_0 : i32, i32
  }
  func.func @transform_2(%arg0: i32) -> (i32, i32) {
    %c0_i32 = arith.constant 0 : i32
    %c0_i32_0 = arith.constant 0 : i32
    %c0_i32_1 = arith.constant 0 : i32
    return %c0_i32, %c0_i32_0 : i32, i32
  }
  func.func @transform_3(%arg0: i32) -> (i32, i32) {
    %c0_i32 = arith.constant 0 : i32
    %c0_i32_0 = arith.constant 0 : i32
    %c0_i32_1 = arith.constant 0 : i32
    return %c0_i32, %c0_i32_0 : i32, i32
  }
  func.func @transform_4(%arg0: i32) -> (i32, i32) {
    %c0_i32 = arith.constant 0 : i32
    %c0_i32_0 = arith.constant 0 : i32
    %c0_i32_1 = arith.constant 0 : i32
    return %c0_i32, %c0_i32_0 : i32, i32
  }
  func.func @transform_5(%arg0: i32) -> (i32, i32) {
    %c0_i32 = arith.constant 0 : i32
    %c0_i32_0 = arith.constant 0 : i32
    return %arg0, %c0_i32 : i32, i32
  }
}

</mosaic_0001>

<bundles_post_ra>
// kernel: tpu_custom_call.1
= control target key start
LH: loop header
LB: loop body
LE: loop exit
PB: predicated region body
PF: predicated region fallthrough
CT: control target
= control target key end

     0   :  { %v3343_v3 = vmov 0.0|0.0   ;;  %vm3344_vm0 = vmmov 0   ;;  %v3345_v11 = vmov 0.0   ;;  %s3864_s0 = inlined_call_operand.vmem [shape: f32[4,128], index: 0, kind: input, shape index: {}]   ;;  %s3865_s1 = inlined_call_operand.vmem [shape: f32[1,128], index: 1, kind: input, shape index: {}]   ;;  %s3866_s2 = inlined_call_operand.vmem [shape: f32[1,128], index: 2, kind: input, shape index: {}]   ;;  %s3867_s3 = inlined_call_operand.vmem [shape: f32[128,4], index: 3, kind: input, shape index: {}]   ;;  %s3868_s4 = inlined_call_operand.vmem [shape: f32[4,128], index: 4, kind: input, shape index: {}]   ;;  %s3869_s5 = inlined_call_operand.hbm [shape: f32[4,128], index: 5, kind: output, shape index: {}]  }
   0x1   :  { %v22_v0 = vld [vmem:[%s3867_s3] sm:$0xff]  ;;  %v23_v1 = vld [vmem:[%s3867_s3 + $0x8] sm:$0xff]  ;;  %v24_v2 = vld [vmem:[%s3867_s3 + $0x10] sm:$0xff]  ;;  %2983 = vmatprep.subr.bf16.mxu0 %v3343_v3  ;;  %3127 = vmatprep.subr.bf16.mxu1 %v3343_v3 }
   0x2   :  { %v40_v4 = vand.u32 4294901760, %v22_v0  ;;  %v43_v5 = vand.u32 4294901760, %v23_v1  ;;  %v3391_v6 = vld [vmem:[%s3867_s3 + $0x18] sm:$0xff]  ;;  %v46_v7 = vand.u32 4294901760, %v24_v2  ;;  %v3397_v9 = vld [vmem:[%s3867_s3 + $0x20] sm:$0xff]  ;;  %v3402_v10 = vld [vmem:[%s3867_s3 + $0x28] sm:$0xff]  ;;  %2535 = vmatprep.mubr.msk.f32.mxu0 %vm3344_vm0, %v3345_v11  ;;  %2745 = vmatprep.mubr.msk.f32.mxu1 %vm3344_vm0, %v3345_v11 }
   0x3   :  { %v49_v8 = vand.u32 4294901760, %v3391_v6  ;;  %v52_v14 = vand.u32 4294901760, %v3397_v9  ;;  %v55_v15 = vand.u32 4294901760, %v3402_v10  ;;  %v3423_v16 = vld [vmem:[%s3867_s3 + $0x30] sm:$0xff]  ;;  %v3428_v17 = vld [vmem:[%s3867_s3 + $0x38] sm:$0xff] }
   0x4   :  { %v3408_v12 = vpack.c.bf16 %v43_v5, %v40_v4 }
   0x5   :  { %v3414_v13 = vpack.c.bf16 %v49_v8, %v46_v7 }
   0x6   :  { %2985 = vmatpush3.bf16.msra.mxu0 %v3408_v12  ;;  %3129 = vmatpush3.bf16.msra.mxu1 %v3408_v12 }
   0x7   :  { %2986 = vmatprep.subr.bf16.mxu0 %v3343_v3  ;;  %3130 = vmatprep.subr.bf16.mxu1 %v3343_v3 }
   0x8   :  { %10 = vsyncpa [#allocation3], 0  ;;  %v3433_v18 = vld [vmem:[%s3864_s0] sm:$0xf]  ;;  %v3437_v19 = vpack.c.bf16 %v55_v15, %v52_v14  ;;  %v58_v20 = vand.u32 4294901760, %v3423_v16  ;;  %v61_v21 = vand.u32 4294901760, %v3428_v17  ;;  %v3476_v35 = vsub.f32 %v22_v0, %v40_v4 }
   0x9   :  { %v30_v22 = vld [vmem:[%s3867_s3 + $0x40] sm:$0xff]  ;;  %v31_v23 = vld [vmem:[%s3867_s3 + $0x48] sm:$0xff]  ;;  %v3450_v24 = vand.u32 4294901760, %v3433_v18  ;;  %v680_v25 = vmul.f32 %v3433_v18, %v3433_v18  ;;  %v32_v26 = vld [vmem:[%s3867_s3 + $0x50] sm:$0xff]  ;;  %v3484_v37 = vsub.f32 %v23_v1, %v43_v5  ;;  %v3486_v38 = vsub.f32 %v24_v2, %v46_v7  ;;  %s3346_s30 = smov [#allocation2]  }
   0xa   :  { %2988 = vmatpush3.bf16.msra.mxu0 %v3414_v13  ;;  %3132 = vmatpush3.bf16.msra.mxu1 %v3414_v13  ;;  %v33_v27 = vld [vmem:[%s3867_s3 + $0x58] sm:$0xff]  ;;  %v34_v28 = vld [vmem:[%s3867_s3 + $0x60] sm:$0xff]  ;;  %v3465_v29 = vpack.c.bf16 %v61_v21, %v58_v20  ;;  %v64_v30 = vand.u32 4294901760, %v30_v22  ;;  %v67_v31 = vand.u32 4294901760, %v31_v23  ;;  %v35_v32 = vld [vmem:[%s3867_s3 + $0x68] sm:$0xff]  ;;  %v70_v39 = vand.u32 4294901760, %v32_v26 }
   0xb   :  { %2989 = vmatprep.subr.bf16.mxu0 %v3343_v3  ;;  %3133 = vmatprep.subr.bf16.mxu1 %v3343_v3  ;;  %v36_v33 = vld [vmem:[%s3867_s3 + $0x70] sm:$0xff]  ;;  %v37_v34 = vld [vmem:[%s3867_s3 + $0x78] sm:$0xff]  ;;  %v3482_v36 = vsub.f32 %v3433_v18, %v3450_v24  ;;  %v73_v40 = vand.u32 4294901760, %v33_v27  ;;  %v3488_v41 = vand.u32 4294901760, %v680_v25  ;;  %v76_v42 = vand.u32 4294901760, %v34_v28  ;;  %s2265_s6 = sshll.u32 %s3346_s30, 4  ;;  %s2266_s6 = int_to_ptr.vmem [resolvable:$true] %s2265_s6 }
   0xc   :  { %v79_v43 = vand.u32 4294901760, %v35_v32  ;;  %v82_v44 = vand.u32 4294901760, %v36_v33  ;;  %v85_v45 = vand.u32 4294901760, %v37_v34  ;;  %v3492_v46 = vpack.c.bf16 %v67_v31, %v64_v30  ;;  %s3319_s7 = scalar_lea.vmem %s2266_s6, 64  ;;  %p3324_p1 = scmp.lt.s32.totalorder %s2266_s6, %s2266_s6 }
   0xd   :  { %v133_v47 = vand.u32 4294901760, %v3476_v35  ;;  %v3871_v48 = vand.u32 4294901760, %v3482_v36  ;;  %v140_v49 = vand.u32 4294901760, %v3484_v37  ;;  %v147_v50 = vand.u32 4294901760, %v3486_v38  ;;  %p3320_p0 = scmp.ne.s32.totalorder %s2266_s6, %s3319_s7  ;;  %p3325_p2 = scmp.lt.s32.totalorder %s3319_s7, %s3319_s7 }
   0xe   :  { %2991 = vmatpush3.bf16.msra.mxu0 %v3437_v19  ;;  %3135 = vmatpush3.bf16.msra.mxu1 %v3437_v19  ;;  %v3503_v51 = vsub.f32 %v3391_v6, %v49_v8  ;;  %v3506_v52 = vsub.f32 %v680_v25, %v3488_v41  ;;  %v3508_v53 = vpack.c.bf16 %v73_v40, %v70_v39  ;;  %vm1341_vm1 = vcmask 1043456  }
   0xf   :  { %2992 = vmatprep.subr.bf16.mxu0 %v3343_v3  ;;  %3136 = vmatprep.subr.bf16.mxu1 %v3343_v3  ;;  %v3510_v54 = vpack.c.bf16 %v79_v43, %v76_v42  ;;  %v3512_v55 = vpack.c.bf16 %v85_v45, %v82_v44  ;;  %v134_v56 = vsub.f32 %v3476_v35, %v133_v47  ;;  %vm1337_vm2 = vcmask 31744   ;;  %p3326_p3 = por %p3325_p2, %p3324_p1 }
  0x10   :  { %v3518_v57 = vsub.f32 %v3397_v9, %v52_v14  ;;  %v3521_v58 = vsub.f32 %v3402_v10, %v55_v15  ;;  %v123_v59 = vsub.f32 %v3482_v36, %v3871_v48  ;;  %v141_v60 = vsub.f32 %v3484_v37, %v140_v49 }
  0x11   :  { %v3530_v61 = vsub.f32 %v3486_v38, %v147_v50  ;;  %v154_v62 = vand.u32 4294901760, %v3503_v51  ;;  %v3870_v63 = vand.u32 4294901760, %v3506_v52  ;;  %v3535_v0 = vsub.f32 %v3423_v16, %v58_v20  ;;  %p3327_p4 = pnand %p3326_p3, %p3320_p0 }
  0x12   :  { %2994 = vmatpush3.bf16.msra.mxu0 %v3465_v29  ;;  %3138 = vmatpush3.bf16.msra.mxu1 %v3465_v29  ;;  %v3538_v1 = vsub.f32 %v3428_v17, %v61_v21  ;;  %v3540_v2 = vsub.f32 %v30_v22, %v64_v30  ;;  %v3542_v4 = vsub.f32 %v31_v23, %v67_v31  ;;  %v161_v8 = vand.u32 4294901760, %v3518_v57 }
  0x13   :  { %2995 = vmatprep.subr.bf16.mxu0 %v3343_v3  ;;  %3139 = vmatprep.subr.bf16.mxu1 %v3343_v3  ;;  %v3544_v5 = vsub.f32 %v32_v26, %v70_v39  ;;  %v3546_v6 = vsub.f32 %v33_v27, %v73_v40  ;;  %v3548_v7 = vsub.f32 %v34_v28, %v76_v42  ;;  %v135_v15 = vand.u32 4294901760, %v134_v56 }
  0x14   :  { %v3553_v9 = vsub.f32 %v35_v32, %v79_v43  ;;  %v3555_v10 = vsub.f32 %v36_v33, %v82_v44  ;;  %v3557_v14 = vsub.f32 %v37_v34, %v85_v45  ;;  %v142_v16 = vand.u32 4294901760, %v141_v60 }
  0x15   :  { %v155_v17 = vsub.f32 %v3503_v51, %v154_v62  ;;  %v168_v20 = vand.u32 4294901760, %v3521_v58  ;;  %v765_v21 = vsub.f32 %v3506_v52, %v3870_v63  ;;  %v175_v22 = vand.u32 4294901760, %v3535_v0 }
  0x16   :  { %2997 = vmatpush3.bf16.msra.mxu0 %v3492_v46  ;;  %3141 = vmatpush3.bf16.msra.mxu1 %v3492_v46  ;;  %v182_v23 = vand.u32 4294901760, %v3538_v1  ;;  %v189_v25 = vand.u32 4294901760, %v3540_v2  ;;  %v196_v26 = vand.u32 4294901760, %v3542_v4  ;;  %v203_v27 = vand.u32 4294901760, %v3544_v5 }
  0x17   :  { %2998 = vmatprep.subr.bf16.mxu0 %v3343_v3  ;;  %3142 = vmatprep.subr.bf16.mxu1 %v3343_v3  ;;  %v210_v28 = vand.u32 4294901760, %v3546_v6  ;;  %v217_v30 = vand.u32 4294901760, %v3548_v7  ;;  %v224_v31 = vand.u32 4294901760, %v3553_v9  ;;  %v231_v32 = vand.u32 4294901760, %v3555_v10 }
  0x18   :  { %v3872_v33 = vand.u32 4294901760, %v3557_v14  ;;  %v3578_v34 = vpack.c.bf16 %v140_v49, %v133_v47  ;;  %v3582_v39 = vpack.c.bf16 %v154_v62, %v147_v50  ;;  %v3584_v40 = vpack.c.bf16 %v168_v20, %v161_v8 }
  0x19   :  { %v3586_v42 = vpack.c.bf16 %v182_v23, %v175_v22  ;;  %v3588_v43 = vpack.c.bf16 %v196_v26, %v189_v25  ;;  %v3590_v44 = vpack.c.bf16 %v210_v28, %v203_v27  ;;  %v3592_v45 = vpack.c.bf16 %v224_v31, %v217_v30 }
  0x1a   :  { %3000 = vmatpush3.bf16.msra.mxu0 %v3508_v53  ;;  %3144 = vmatpush3.bf16.msra.mxu1 %v3508_v53  ;;  %v3598_v47 = vpack.c.bf16 %v3872_v33, %v231_v32  ;;  %v124_v49 = vand.u32 4294901760, %v123_v59  ;;  %v766_v56 = vand.u32 4294901760, %v765_v21  ;;  %v162_v50 = vsub.f32 %v3518_v57, %v161_v8 }
  0x1b   :  { %3001 = vmatprep.subr.bf16.mxu0 %v3343_v3  ;;  %3145 = vmatprep.subr.bf16.mxu1 %v3343_v3  ;;  %v169_v60 = vsub.f32 %v3521_v58, %v168_v20  ;;  %v3008_v62 = vpack.c.bf16 %v142_v16, %v135_v15  ;;  %v149_v63 = vand.u32 4294901760, %v3530_v61  ;;  %v156_v48 = vand.u32 4294901760, %v155_v17 }
  0x1c   :  { %v163_v59 = vand.u32 4294901760, %v162_v50  ;;  %v176_v20 = vsub.f32 %v3535_v0, %v175_v22  ;;  %v183_v33 = vsub.f32 %v3538_v1, %v182_v23  ;;  %v204_v17 = vsub.f32 %v3544_v5, %v203_v27 }
  0x1d   :  { %v170_v21 = vand.u32 4294901760, %v169_v60  ;;  %v3011_v8 = vpack.c.bf16 %v156_v48, %v149_v63  ;;  %v190_v48 = vsub.f32 %v3540_v2, %v189_v25  ;;  %v197_v63 = vsub.f32 %v3542_v4, %v196_v26 }
  0x1e   :  { %3003 = vmatpush3.bf16.msra.mxu0 %v3510_v54  ;;  %3147 = vmatpush3.bf16.msra.mxu1 %v3510_v54  ;;  %v177_v15 = vand.u32 4294901760, %v176_v20  ;;  %v184_v16 = vand.u32 4294901760, %v183_v33  ;;  %v218_v25 = vsub.f32 %v3548_v7, %v217_v30  ;;  %v205_v33 = vand.u32 4294901760, %v204_v17 }
  0x1f   :  { %3004 = vmatprep.subr.bf16.mxu0 %v3343_v3  ;;  %3148 = vmatprep.subr.bf16.mxu1 %v3343_v3  ;;  %v3014_v61 = vpack.c.bf16 %v170_v21, %v163_v59  ;;  %v191_v23 = vand.u32 4294901760, %v190_v48  ;;  %v225_v27 = vsub.f32 %v3553_v9, %v224_v31  ;;  %v232_v30 = vsub.f32 %v3555_v10, %v231_v32 }
  0x20   :  { %v3017_v22 = vpack.c.bf16 %v184_v16, %v177_v15  ;;  %v219_v60 = vand.u32 4294901760, %v218_v25  ;;  %v3873_v59 = vand.u32 4294901760, %v3557_v14  ;;  %v3035_v15 = vpack.c.bf16 %v3503_v51, %v3486_v38  ;;  %v2273_v25 = vld [vmem:[%s3865_s1] ss:$0 sm:$0xff] }
  0x21   :  { %v3044_v38 = vpack.c.bf16 %v3542_v4, %v3540_v2  ;;  %v3047_v51 = vpack.c.bf16 %v3546_v6, %v3544_v5 }
  0x22   :  { %3006 = vmatpush3.bf16.msra.mxu0 %v3512_v55  ;;  %3150 = vmatpush3.bf16.msra.mxu1 %v3512_v55  ;;  %v239_v21 = vsub.f32 %v3557_v14, %v3873_v59 }
  0x23   :  { %3007 = vmatprep.subr.bf16.mxu0 %v3343_v3  ;;  %3151 = vmatprep.subr.bf16.mxu1 %v3343_v3 }
  0x24   :  { %v240_v20 = vand.u32 4294901760, %v239_v21 }
  0x25   :  { %2536 = vmatmul.mubr.f32.vlgmr.msra.gmra.mrb[0].mxu0 %v124_v49  ;;  %2746 = vmatmul.mubr.f32.vlgmr.msra.gmra.mrb[0].mxu1 %v766_v56  ;;  %v198_v49 = vand.u32 4294901760, %v197_v63  ;;  %v211_v56 = vsub.f32 %v3546_v6, %v210_v28 }
  0x26   :  { %3009 = vmatpush3.bf16.msra.mxu0 %v3008_v62  ;;  %3153 = vmatpush3.bf16.msra.mxu1 %v3008_v62  ;;  %v226_v62 = vand.u32 4294901760, %v225_v27 }
  0x27   :  { %3010 = vmatprep.subr.bf16.mxu0 %v3343_v3  ;;  %3154 = vmatprep.subr.bf16.mxu1 %v3343_v3  ;;  %v3020_v26 = vpack.c.bf16 %v198_v49, %v191_v23  ;;  %v212_v50 = vand.u32 4294901760, %v211_v56 }
  0x28   :  { %2570 = vmatprep.mubr.msk.f32.mxu0 %vm3344_vm0, %v3345_v11  ;;  %2780 = vmatprep.mubr.msk.f32.mxu1 %vm3344_vm0, %v3345_v11  ;;  %v3026_v31 = vpack.c.bf16 %v226_v62, %v219_v60  ;;  %v2274_v60 = vld [vmem:[%s3866_s2] ss:$0 sm:$0xff] }
  0x29   :  { %v3023_v28 = vpack.c.bf16 %v212_v50, %v205_v33 }
  0x2a   :  { %3012 = vmatpush3.bf16.msra.mxu0 %v3011_v8  ;;  %3156 = vmatpush3.bf16.msra.mxu1 %v3011_v8  ;;  %v233_v8 = vand.u32 4294901760, %v232_v30 }
  0x2b   :  { %3013 = vmatprep.subr.bf16.mxu0 %v3343_v3  ;;  %3157 = vmatprep.subr.bf16.mxu1 %v3343_v3 }
  0x2c   :  { %v3029_v32 = vpack.c.bf16 %v240_v20, %v233_v8 }
  0x2e   :  { %3015 = vmatpush3.bf16.msra.mxu0 %v3014_v61  ;;  %3159 = vmatpush3.bf16.msra.mxu1 %v3014_v61  ;;  %v3032_v61 = vpack.c.bf16 %v3484_v37, %v3476_v35  ;;  %v3038_v35 = vpack.c.bf16 %v3521_v58, %v3518_v57  ;;  %v3041_v37 = vpack.c.bf16 %v3538_v1, %v3535_v0  ;;  %v3874_v0 = vand.u32 4294901760, %v3482_v36 }
  0x2f   :  { %3016 = vmatprep.subr.bf16.mxu0 %v3343_v3  ;;  %3160 = vmatprep.subr.bf16.mxu1 %v3343_v3  ;;  %v3050_v57 = vpack.c.bf16 %v3553_v9, %v3548_v7  ;;  %v3053_v58 = vpack.c.bf16 %v3557_v14, %v3555_v10  ;;  %v3875_v1 = vand.u32 4294901760, %v3506_v52 }
  0x32   :  { %3018 = vmatpush3.bf16.msra.mxu0 %v3017_v22  ;;  %3162 = vmatpush3.bf16.msra.mxu1 %v3017_v22 }
  0x33   :  { %3019 = vmatprep.subr.bf16.mxu0 %v3343_v3  ;;  %3163 = vmatprep.subr.bf16.mxu1 %v3343_v3 }
  0x36   :  { %3021 = vmatpush3.bf16.msra.mxu0 %v3020_v26  ;;  %3165 = vmatpush3.bf16.msra.mxu1 %v3020_v26 }
  0x37   :  { %3022 = vmatprep.subr.bf16.mxu0 %v3343_v3  ;;  %3166 = vmatprep.subr.bf16.mxu1 %v3343_v3 }
  0x3a   :  { %3024 = vmatpush3.bf16.msra.mxu0 %v3023_v28  ;;  %3168 = vmatpush3.bf16.msra.mxu1 %v3023_v28 }
  0x3b   :  { %3025 = vmatprep.subr.bf16.mxu0 %v3343_v3  ;;  %3169 = vmatprep.subr.bf16.mxu1 %v3343_v3 }
  0x3e   :  { %3027 = vmatpush3.bf16.msra.mxu0 %v3026_v31  ;;  %3171 = vmatpush3.bf16.msra.mxu1 %v3026_v31 }
  0x3f   :  { %3028 = vmatprep.subr.bf16.mxu0 %v3343_v3  ;;  %3172 = vmatprep.subr.bf16.mxu1 %v3343_v3 }
  0x42   :  { %3030 = vmatpush3.bf16.msra.mxu0 %v3029_v32  ;;  %3174 = vmatpush3.bf16.msra.mxu1 %v3029_v32 }
  0x43   :  { %3031 = vmatprep.subr.bf16.mxu0 %v3343_v3  ;;  %3175 = vmatprep.subr.bf16.mxu1 %v3343_v3 }
  0x45   :  { %2571 = vmatmul.mubr.f32.vlgmr.msra.gmra.mrb[0].mxu0 %v3450_v24  ;;  %2781 = vmatmul.mubr.f32.vlgmr.msra.gmra.mrb[0].mxu1 %v3488_v41 }
  0x46   :  { %3033 = vmatpush3.bf16.msra.mxu0 %v3032_v61  ;;  %3177 = vmatpush3.bf16.msra.mxu1 %v3032_v61 }
  0x47   :  { %3034 = vmatprep.subr.bf16.mxu0 %v3343_v3  ;;  %3178 = vmatprep.subr.bf16.mxu1 %v3343_v3 }
  0x48   :  { %2605 = vmatprep.mubr.msk.f32.mxu0 %vm3344_vm0, %v3345_v11  ;;  %2815 = vmatprep.mubr.msk.f32.mxu1 %vm3344_vm0, %v3345_v11 }
  0x4a   :  { %3036 = vmatpush3.bf16.msra.mxu0 %v3035_v15  ;;  %3180 = vmatpush3.bf16.msra.mxu1 %v3035_v15 }
  0x4b   :  { %3037 = vmatprep.subr.bf16.mxu0 %v3343_v3  ;;  %3181 = vmatprep.subr.bf16.mxu1 %v3343_v3 }
  0x4e   :  { %3039 = vmatpush3.bf16.msra.mxu0 %v3038_v35  ;;  %3183 = vmatpush3.bf16.msra.mxu1 %v3038_v35 }
  0x4f   :  { %3040 = vmatprep.subr.bf16.mxu0 %v3343_v3  ;;  %3184 = vmatprep.subr.bf16.mxu1 %v3343_v3 }
  0x52   :  { %3042 = vmatpush3.bf16.msra.mxu0 %v3041_v37  ;;  %3186 = vmatpush3.bf16.msra.mxu1 %v3041_v37 }
  0x53   :  { %3043 = vmatprep.subr.bf16.mxu0 %v3343_v3  ;;  %3187 = vmatprep.subr.bf16.mxu1 %v3343_v3 }
  0x56   :  { %3045 = vmatpush3.bf16.msra.mxu0 %v3044_v38  ;;  %3189 = vmatpush3.bf16.msra.mxu1 %v3044_v38 }
  0x57   :  { %3046 = vmatprep.subr.bf16.mxu0 %v3343_v3  ;;  %3190 = vmatprep.subr.bf16.mxu1 %v3343_v3 }
  0x5a   :  { %3048 = vmatpush3.bf16.msra.mxu0 %v3047_v51  ;;  %3192 = vmatpush3.bf16.msra.mxu1 %v3047_v51 }
  0x5b   :  { %3049 = vmatprep.subr.bf16.mxu0 %v3343_v3  ;;  %3193 = vmatprep.subr.bf16.mxu1 %v3343_v3 }
  0x5e   :  { %3051 = vmatpush3.bf16.msra.mxu0 %v3050_v57  ;;  %3195 = vmatpush3.bf16.msra.mxu1 %v3050_v57 }
  0x5f   :  { %3052 = vmatprep.subr.bf16.mxu0 %v3343_v3  ;;  %3196 = vmatprep.subr.bf16.mxu1 %v3343_v3 }
  0x62   :  { %3054 = vmatpush3.bf16.msra.mxu0 %v3053_v58  ;;  %3198 = vmatpush3.bf16.msra.mxu1 %v3053_v58 }
  0x63   :  { %3055 = vmatprep.subr.bf16.mxu0 %v3343_v3  ;;  %3199 = vmatprep.subr.bf16.mxu1 %v3343_v3 }
  0x65   :  { %2606 = vmatmul.mubr.f32.vlgmr.msra.gmra.mrb[0].mxu0 %v3482_v36  ;;  %2816 = vmatmul.mubr.f32.vlgmr.msra.gmra.mrb[0].mxu1 %v3506_v52 }
  0x66   :  { %3057 = vmatpush3.bf16.msra.mxu0 %v3408_v12  ;;  %3201 = vmatpush3.bf16.msra.mxu1 %v3408_v12 }
  0x67   :  { %3058 = vmatprep.subr.bf16.mxu0 %v3343_v3  ;;  %3202 = vmatprep.subr.bf16.mxu1 %v3343_v3 }
  0x68   :  { %2640 = vmatprep.mubr.msk.f32.mxu0 %vm3344_vm0, %v3345_v11  ;;  %2850 = vmatprep.mubr.msk.f32.mxu1 %vm3344_vm0, %v3345_v11 }
  0x6a   :  { %3060 = vmatpush3.bf16.msra.mxu0 %v3414_v13  ;;  %3204 = vmatpush3.bf16.msra.mxu1 %v3414_v13 }
  0x6b   :  { %3061 = vmatprep.subr.bf16.mxu0 %v3343_v3  ;;  %3205 = vmatprep.subr.bf16.mxu1 %v3343_v3 }
  0x6e   :  { %3063 = vmatpush3.bf16.msra.mxu0 %v3437_v19  ;;  %3207 = vmatpush3.bf16.msra.mxu1 %v3437_v19 }
  0x6f   :  { %3064 = vmatprep.subr.bf16.mxu0 %v3343_v3  ;;  %3208 = vmatprep.subr.bf16.mxu1 %v3343_v3 }
  0x72   :  { %3066 = vmatpush3.bf16.msra.mxu0 %v3465_v29  ;;  %3210 = vmatpush3.bf16.msra.mxu1 %v3465_v29 }
  0x73   :  { %3067 = vmatprep.subr.bf16.mxu0 %v3343_v3  ;;  %3211 = vmatprep.subr.bf16.mxu1 %v3343_v3 }
  0x76   :  { %3069 = vmatpush3.bf16.msra.mxu0 %v3492_v46  ;;  %3213 = vmatpush3.bf16.msra.mxu1 %v3492_v46 }
  0x77   :  { %3070 = vmatprep.subr.bf16.mxu0 %v3343_v3  ;;  %3214 = vmatprep.subr.bf16.mxu1 %v3343_v3 }
  0x7a   :  { %3072 = vmatpush3.bf16.msra.mxu0 %v3508_v53  ;;  %3216 = vmatpush3.bf16.msra.mxu1 %v3508_v53 }
  0x7b   :  { %3073 = vmatprep.subr.bf16.mxu0 %v3343_v3  ;;  %3217 = vmatprep.subr.bf16.mxu1 %v3343_v3 }
  0x7e   :  { %3075 = vmatpush3.bf16.msra.mxu0 %v3510_v54  ;;  %3219 = vmatpush3.bf16.msra.mxu1 %v3510_v54 }
  0x7f   :  { %3076 = vmatprep.subr.bf16.mxu0 %v3343_v3  ;;  %3220 = vmatprep.subr.bf16.mxu1 %v3343_v3 }
  0x82   :  { %3078 = vmatpush3.bf16.msra.mxu0 %v3512_v55  ;;  %3222 = vmatpush3.bf16.msra.mxu1 %v3512_v55 }
  0x83   :  { %3079 = vmatprep.subr.bf16.mxu0 %v3343_v3  ;;  %3223 = vmatprep.subr.bf16.mxu1 %v3343_v3 }
  0x85   :  { %2641 = vmatmul.mubr.f32.vlgmr.msra.gmra.mrb[0].mxu0 %v3874_v0  ;;  %2851 = vmatmul.mubr.f32.vlgmr.msra.gmra.mrb[0].mxu1 %v3875_v1 }
  0x86   :  { %3081 = vmatpush3.bf16.msra.mxu0 %v3578_v34  ;;  %3225 = vmatpush3.bf16.msra.mxu1 %v3578_v34 }
  0x87   :  { %3082 = vmatprep.subr.bf16.mxu0 %v3343_v3  ;;  %3226 = vmatprep.subr.bf16.mxu1 %v3343_v3 }
  0x88   :  { %2675 = vmatprep.mubr.msk.f32.mxu0 %vm3344_vm0, %v3345_v11  ;;  %2885 = vmatprep.mubr.msk.f32.mxu1 %vm3344_vm0, %v3345_v11 }
  0x8a   :  { %3084 = vmatpush3.bf16.msra.mxu0 %v3582_v39  ;;  %3228 = vmatpush3.bf16.msra.mxu1 %v3582_v39 }
  0x8b   :  { %3085 = vmatprep.subr.bf16.mxu0 %v3343_v3  ;;  %3229 = vmatprep.subr.bf16.mxu1 %v3343_v3 }
  0x8e   :  { %3087 = vmatpush3.bf16.msra.mxu0 %v3584_v40  ;;  %3231 = vmatpush3.bf16.msra.mxu1 %v3584_v40 }
  0x8f   :  { %3088 = vmatprep.subr.bf16.mxu0 %v3343_v3  ;;  %3232 = vmatprep.subr.bf16.mxu1 %v3343_v3 }
  0x92   :  { %3090 = vmatpush3.bf16.msra.mxu0 %v3586_v42  ;;  %3234 = vmatpush3.bf16.msra.mxu1 %v3586_v42 }
  0x93   :  { %3091 = vmatprep.subr.bf16.mxu0 %v3343_v3  ;;  %3235 = vmatprep.subr.bf16.mxu1 %v3343_v3 }
  0x96   :  { %3093 = vmatpush3.bf16.msra.mxu0 %v3588_v43  ;;  %3237 = vmatpush3.bf16.msra.mxu1 %v3588_v43 }
  0x97   :  { %3094 = vmatprep.subr.bf16.mxu0 %v3343_v3  ;;  %3238 = vmatprep.subr.bf16.mxu1 %v3343_v3 }
  0x9a   :  { %3096 = vmatpush3.bf16.msra.mxu0 %v3590_v44  ;;  %3240 = vmatpush3.bf16.msra.mxu1 %v3590_v44 }
  0x9b   :  { %3097 = vmatprep.subr.bf16.mxu0 %v3343_v3  ;;  %3241 = vmatprep.subr.bf16.mxu1 %v3343_v3 }
  0x9e   :  { %3099 = vmatpush3.bf16.msra.mxu0 %v3592_v45  ;;  %3243 = vmatpush3.bf16.msra.mxu1 %v3592_v45 }
  0x9f   :  { %3100 = vmatprep.subr.bf16.mxu0 %v3343_v3  ;;  %3244 = vmatprep.subr.bf16.mxu1 %v3343_v3 }
  0xa2   :  { %3102 = vmatpush3.bf16.msra.mxu0 %v3598_v47  ;;  %3246 = vmatpush3.bf16.msra.mxu1 %v3598_v47 }
  0xa3   :  { %3103 = vmatprep.subr.bf16.mxu0 %v3343_v3  ;;  %3247 = vmatprep.subr.bf16.mxu1 %v3343_v3 }
  0xa5   :  { %2676 = vmatmul.mubr.f32.vlgmr.msra.gmra.mrb[0].mxu0 %v3450_v24  ;;  %2886 = vmatmul.mubr.f32.vlgmr.msra.gmra.mrb[0].mxu1 %v3488_v41 }
  0xa6   :  { %3105 = vmatpush3.bf16.msra.mxu0 %v3408_v12  ;;  %3249 = vmatpush3.bf16.msra.mxu1 %v3408_v12 }
  0xa7   :  { %3106 = vmatprep.subr.bf16.mxu0 %v3343_v3  ;;  %3250 = vmatprep.subr.bf16.mxu1 %v3343_v3 }
  0xa8   :  { %2710 = vmatprep.mubr.msk.f32.mxu0 %vm3344_vm0, %v3345_v11  ;;  %2920 = vmatprep.mubr.msk.f32.mxu1 %vm3344_vm0, %v3345_v11 }
  0xaa   :  { %3108 = vmatpush3.bf16.msra.mxu0 %v3414_v13  ;;  %3252 = vmatpush3.bf16.msra.mxu1 %v3414_v13 }
  0xab   :  { %3109 = vmatprep.subr.bf16.mxu0 %v3343_v3  ;;  %3253 = vmatprep.subr.bf16.mxu1 %v3343_v3 }
  0xae   :  { %3111 = vmatpush3.bf16.msra.mxu0 %v3437_v19  ;;  %3255 = vmatpush3.bf16.msra.mxu1 %v3437_v19 }
  0xaf   :  { %3112 = vmatprep.subr.bf16.mxu0 %v3343_v3  ;;  %3256 = vmatprep.subr.bf16.mxu1 %v3343_v3 }
  0xb2   :  { %3114 = vmatpush3.bf16.msra.mxu0 %v3465_v29  ;;  %3258 = vmatpush3.bf16.msra.mxu1 %v3465_v29 }
  0xb3   :  { %3115 = vmatprep.subr.bf16.mxu0 %v3343_v3  ;;  %3259 = vmatprep.subr.bf16.mxu1 %v3343_v3 }
  0xb6   :  { %3117 = vmatpush3.bf16.msra.mxu0 %v3492_v46  ;;  %3261 = vmatpush3.bf16.msra.mxu1 %v3492_v46 }
  0xb7   :  { %3118 = vmatprep.subr.bf16.mxu0 %v3343_v3  ;;  %3262 = vmatprep.subr.bf16.mxu1 %v3343_v3 }
  0xba   :  { %3120 = vmatpush3.bf16.msra.mxu0 %v3508_v53  ;;  %3264 = vmatpush3.bf16.msra.mxu1 %v3508_v53 }
  0xbb   :  { %3121 = vmatprep.subr.bf16.mxu0 %v3343_v3  ;;  %3265 = vmatprep.subr.bf16.mxu1 %v3343_v3 }
  0xbe   :  { %3123 = vmatpush3.bf16.msra.mxu0 %v3510_v54  ;;  %3267 = vmatpush3.bf16.msra.mxu1 %v3510_v54 }
  0xbf   :  { %3124 = vmatprep.subr.bf16.mxu0 %v3343_v3  ;;  %3268 = vmatprep.subr.bf16.mxu1 %v3343_v3  ;;  %v38_v3 = vld [vmem:[%s3868_s4] sm:$0xf] }
  0xc0   :  { %v1343_v12 = vsel %vm1341_vm1, %v38_v3, 0 }
  0xc1   :  { %v3804_v13 = vand.u32 4294901760, %v1343_v12 }
  0xc2   :  { %3126 = vmatpush3.bf16.msra.mxu0 %v3512_v55  ;;  %3270 = vmatpush3.bf16.msra.mxu1 %v3512_v55 }
  0xc3   :  { %2923 = vmatprep.subr.mxu0 %v3345_v11  ;;  %2953 = vmatprep.subr.mxu1 %v3345_v11  ;;  %v1423_v19 = vsub.f32 %v1343_v12, %v3804_v13 }
  0xc5   :  { %2711 = vmatmul.mubr.f32.vlgmr.msra.gmra.mrb[0].mxu0 %v3450_v24  ;;  %2921 = vmatmul.mubr.f32.vlgmr.msra.gmra.mrb[0].mxu1 %v3488_v41  ;;  %v1424_v54 = vand.u32 4294901760, %v1423_v19 }
  0xc6   :  { %2925 = vmatprep.mubr.msk.f32.mxu0 %vm3344_vm0, %v3345_v11  ;;  %2955 = vmatprep.mubr.msk.f32.mxu1 %vm3344_vm0, %v3345_v11 }
  0xc7   :  { %2924 = vmatpush3.msra.mxu0 %v3804_v13  ;;  %2954 = vmatpush3.msra.mxu1 %v3804_v13  ;;  %v1425_v6 = vsub.f32 %v1423_v19, %v1424_v54 }
  0xc8   :  { %2928 = vmatprep.subr.mxu0 %v3345_v11  ;;  %2958 = vmatprep.subr.mxu1 %v3345_v11 }
  0xc9   :  { %v1426_v14 = vand.u32 4294901760, %v1425_v6 }
 0x198   :  { %v676_v24 = vpop.f32.mrb[0].mxu0  ;;  %v1318_v29 = vpop.f32.mrb[0].mxu1 }
 0x199   :  { %v1322_v36 = vmul.f32 0.03125, %v676_v24  ;;  %v2712_v41 = vpop.f32.mrb[1].mxu0  ;;  %v2922_v46 = vpop.f32.mrb[1].mxu1 }
 0x19b   :  { %v1323_v52 = vmul.f32 %v1322_v36, %v676_v24  ;;  %v1339_v53 = vsel %vm1337_vm2, %v1322_v36, 0 }
 0x19c   :  { %v1411_v55 = vand.u32 4294901760, %v1339_v53 }
 0x19d   :  { %v1324_v2 = vsub.f32 %v1318_v29, %v1323_v52 }
 0x19e   :  { %v1412_v4 = vsub.f32 %v1339_v53, %v1411_v55 }
 0x19f   :  { %v1325_v5 = vmul.f32 0.032258064, %v1324_v2 }
 0x1a0   :  { %v1413_v7 = vand.u32 4294901760, %v1412_v4 }
 0x1a1   :  { %v1326_v9 = vmax.f32 %v1325_v5, 0.0 }
 0x1a2   :  { %v1414_v10 = vsub.f32 %v1412_v4, %v1413_v7 }
 0x1a3   :  { %3315 = vrsqrt.f32 %v1326_v9  ;;  %vm1329_vm3 = vcmp.eq.f32.partialorder %v1326_v9, inf  ;;  %v1332_v42 = vand.u32 2147483648, %v1326_v9  ;;  %vm1331_vm4 = vcmp.eq.f32.partialorder %v1326_v9, 0.0 }
 0x1a4   :  { %v1415_v34 = vand.u32 4294901760, %v1414_v10 }
 0x1a6   :  { %2926 = vmatmul.mubr.f32.vlgmr.msra.gmra.mrb[2].mxu0 %v1415_v34 }
 0x1a7   :  { %2929 = vmatpush3.msra.mxu0 %v1426_v14  ;;  %2930 = vmatprep.mubr.msk.f32.mxu0 %vm3344_vm0, %v3345_v11 }
 0x1a8   :  { %2933 = vmatprep.subr.mxu0 %v3345_v11 }
 0x1ad   :  { %v3316_v39 = vpop.eup %3315 }
 0x1ae   :  { %v1328_v40 = vmul.f32 %v3316_v39, %v1326_v9  ;;  %2931 = vmatmul.mubr.f32.vlgmr.msra.gmra.mrb[2].mxu0 %v1411_v55 }
 0x1af   :  { %2934 = vmatpush3.msra.mxu0 %v1423_v19  ;;  %2935 = vmatprep.mubr.msk.f32.mxu0 %vm3344_vm0, %v3345_v11 }
 0x1b0   :  { %v1330_v43 = vsel %vm1329_vm3, %v1326_v9, %v1328_v40  ;;  %2938 = vmatprep.subr.mxu0 %v3345_v11 }
 0x1b1   :  { %v1333_v44 = vsel %vm1331_vm4, %v1332_v42, %v1330_v43 }
 0x1b2   :  { %v1334_v45 = vadd.f32 1e-06, %v1333_v44 }
 0x1b4   :  { %3317 = vrcp.f32 %v1334_v45 }
 0x1b6   :  { %2936 = vmatmul.mubr.f32.vlgmr.msra.gmra.mrb[2].mxu0 %v1412_v4 }
 0x1b7   :  { %2939 = vmatpush3.msra.mxu0 %v3804_v13  ;;  %2940 = vmatprep.mubr.msk.f32.mxu0 %vm3344_vm0, %v3345_v11 }
 0x1b8   :  { %2943 = vmatprep.subr.mxu0 %v3345_v11 }
 0x1be   :  { %v3318_v47 = vpop.eup %3317  ;;  %2941 = vmatmul.mubr.f32.vlgmr.msra.gmra.mrb[2].mxu0 %v1413_v7 }
 0x1bf   :  { %2944 = vmatpush3.msra.mxu0 %v1424_v54  ;;  %2945 = vmatprep.mubr.msk.f32.mxu0 %vm3344_vm0, %v3345_v11  ;;  %v1792_v16 = vsel %vm1337_vm2, %v3318_v47, 0 }
 0x1c0   :  { %v1860_v48 = vand.u32 4294901760, %v1792_v16  ;;  %2948 = vmatprep.subr.mxu0 %v3345_v11 }
 0x1c2   :  { %v1861_v63 = vsub.f32 %v1792_v16, %v1860_v48 }
 0x1c4   :  { %v1862_v17 = vand.u32 4294901760, %v1861_v63 }
 0x1c6   :  { %2946 = vmatmul.mubr.f32.vlgmr.msra.gmra.mrb[2].mxu0 %v1411_v55  ;;  %v1863_v22 = vsub.f32 %v1861_v63, %v1862_v17 }
 0x1c7   :  { %2949 = vmatpush3.msra.mxu0 %v3804_v13  ;;  %2950 = vmatprep.mubr.msk.f32.mxu0 %vm3344_vm0, %v3345_v11 }
 0x1c8   :  { %v1864_v23 = vand.u32 4294901760, %v1863_v22 }
 0x1ca   :  { %2956 = vmatmul.mubr.f32.vlgmr.msra.gmra.mrb[2].mxu1 %v1864_v23 }
 0x1cb   :  { %2959 = vmatpush3.msra.mxu1 %v1426_v14  ;;  %2960 = vmatprep.mubr.msk.f32.mxu1 %vm3344_vm0, %v3345_v11 }
 0x1cc   :  { %2963 = vmatprep.subr.mxu1 %v3345_v11 }
 0x1ce   :  { %2951 = vmatmul.mubr.f32.vlgmr.msra.gmra.mrb[2].mxu0 %v1411_v55 }
 0x1d2   :  { %2961 = vmatmul.mubr.f32.vlgmr.msra.gmra.mrb[2].mxu1 %v1860_v48 }
 0x1d3   :  { %2964 = vmatpush3.msra.mxu1 %v1423_v19  ;;  %2965 = vmatprep.mubr.msk.f32.mxu1 %vm3344_vm0, %v3345_v11 }
 0x1d4   :  { %2968 = vmatprep.subr.mxu1 %v3345_v11 }
 0x1da   :  { %2966 = vmatmul.mubr.f32.vlgmr.msra.gmra.mrb[2].mxu1 %v1861_v63 }
 0x1db   :  { %2969 = vmatpush3.msra.mxu1 %v3804_v13  ;;  %2970 = vmatprep.mubr.msk.f32.mxu1 %vm3344_vm0, %v3345_v11 }
 0x1dc   :  { %2973 = vmatprep.subr.mxu1 %v3345_v11 }
 0x1e2   :  { %2971 = vmatmul.mubr.f32.vlgmr.msra.gmra.mrb[2].mxu1 %v1862_v17 }
 0x1e3   :  { %2974 = vmatpush3.msra.mxu1 %v1424_v54  ;;  %2975 = vmatprep.mubr.msk.f32.mxu1 %vm3344_vm0, %v3345_v11 }
 0x1e4   :  { %2978 = vmatprep.subr.mxu1 %v3345_v11 }
 0x1ea   :  { %2976 = vmatmul.mubr.f32.vlgmr.msra.gmra.mrb[2].mxu1 %v1860_v48 }
 0x1eb   :  { %2979 = vmatpush3.msra.mxu1 %v3804_v13  ;;  %2980 = vmatprep.mubr.msk.f32.mxu1 %vm3344_vm0, %v3345_v11 }
 0x1f2   :  { %2981 = vmatmul.mubr.f32.vlgmr.msra.gmra.mrb[2].mxu1 %v1860_v48 }
 0x2a1   :  { %v1787_v49 = vpop.f32.mrb[2].mxu0 }
 0x2a2   :  { %v2952_v56 = vpop.f32.mrb[3].mxu0  ;;  %v2240_v33 = vsub.f32 %v3433_v18, %v1787_v49 }
 0x2c5   :  { %v2236_v26 = vpop.f32.mrb[2].mxu1 }
 0x2c6   :  { %v2248_v50 = vmul.f32 %v2273_v25, %v2236_v26  ;;  %v2982_v27 = vpop.f32.mrb[3].mxu1 }
 0x2c8   :  { %v2249_v28 = vmul.f32 %v2248_v50, %v2240_v33 }
 0x2ca   :  { %v2257_v11 = vadd.f32 %v2274_v60, %v2249_v28 }
 0x2cc   :  { %2258 = vst [vmem:[#allocation2] sm:$0xf] %v2257_v11 }
 0x2cd   :  { %3330 = shalt.err (!%p3327_p4)
}
 0x2ce   :  { %s3331_s9 = scalar_lea.hbm %s3869_s5, 64 }
 0x2cf   :  { %p3332_p5 = scmp.ne.s32.totalorder %s3869_s5, %s3331_s9  ;;  %p3335_p6 = scmp.lt.u32.totalorder %s3331_s9, %s3869_s5 }
 0x2d1   :  { %p3337_p7 = pnand %p3335_p6, %p3332_p5 }
 0x2d3   :  { %3340 = shalt.err (!%p3337_p7)
}
 0x2d4   :  { %2268 = dma.vmem_to_hbm [thread:$0]  %s2266_s6, 64, %s3869_s5, [#allocation3]  }
 0x2d5   :  { %3341 = dma.done.wait [#allocation3], 64  }
 0x2d6   :  { %3342 = vsyncadd [#allocation3], 4294967232 }
 0x2d7   :  { %2272 = vsyncpa [#allocation3], 1 }

</bundles_post_ra>
